<compile_context>
chip_gen: v7x
topology: tpu7x:2x2x1
jax: 0.10.0
libtpu: 0.0.40
codegen_flags: <defaults>
</compile_context>

<pallas_src>
import jax
import jax.numpy as jnp
from jax.experimental import pallas as pl
from jax.experimental.pallas import tpu as pltpu


def _identity_dma_kernel(x_hbm_ref, o_hbm_ref, sem):
    """Copy the full input ref to the full output ref with one async DMA."""
    cp = pltpu.make_async_copy(x_hbm_ref, o_hbm_ref, sem.at[0])
    cp.start()
    cp.wait()


def dummy_hopfield_pooling(x: jax.Array) -> jax.Array:
    """Pallas implementation of _DummyHopfieldPooling.forward (identity)."""
    if x.size == 0:
        return x  # nothing to copy

    nbytes = x.size * jnp.dtype(x.dtype).itemsize

    return pl.pallas_call(
        _identity_dma_kernel,
        out_shape=jax.ShapeDtypeStruct(x.shape, x.dtype),
        # Raw HBM refs: no auto-tiling, the kernel performs the copy itself
        # with a single DMA at raw DMA-engine bandwidth.
        in_specs=[pl.BlockSpec(memory_space=pl.ANY)],
        out_specs=pl.BlockSpec(memory_space=pl.ANY),
        scratch_shapes=[pltpu.SemaphoreType.DMA((1,))],
        # Purely memory-bound: read nbytes + write nbytes, zero flops.
        cost_estimate=pl.CostEstimate(
            flops=0, transcendentals=0, bytes_accessed=2 * nbytes
        ),
    )(x)


if __name__ == "__main__":
    key = jax.random.PRNGKey(0)

    # Small NCHW input consistent with the module's usage as a pooling layer.
    x = jax.random.normal(key, (2, 4, 16, 16), dtype=jnp.float32)

    fwd = jax.jit(dummy_hopfield_pooling)
    y = jax.block_until_ready(fwd(x))

    assert y.shape == x.shape, (y.shape, x.shape)
    assert y.dtype == x.dtype, (y.dtype, x.dtype)
    assert bool(jnp.array_equal(y, x)), "identity mismatch (f32 NCHW)"

    # Odd total size (not a multiple of 128): previously hit a masked
    # narrow-lane fallback; the DMA path handles it directly.
    x_odd = jax.random.normal(key, (3, 5, 7), dtype=jnp.float32)
    y_odd = jax.block_until_ready(jax.jit(dummy_hopfield_pooling)(x_odd))
    assert bool(jnp.array_equal(y_odd, x_odd)), "identity mismatch (odd shape)"

    # Sub-32-bit dtype: no packing needed, the DMA copies raw bytes.
    x_bf16 = jax.random.normal(key, (2, 8, 384), dtype=jnp.bfloat16)
    y_bf16 = jax.block_until_ready(jax.jit(dummy_hopfield_pooling)(x_bf16))
    assert bool(jnp.array_equal(y_bf16, x_bf16)), "identity mismatch (bf16)"

    print("KERNEL_OK")
</pallas_src>

<mosaic_0001>
module attributes {stable_mosaic.version = 11 : i64} {
  func.func @_identity_dma_kernel(%arg0: memref<2x4x16x16xf32, #tpu.memory_space<any>>, %arg1: memref<2x4x16x16xf32, #tpu.memory_space<any>>, %arg2: memref<1x!tpu.dma_semaphore, #tpu.memory_space<semaphore_mem>>) attributes {dimension_semantics = [], scalar_prefetch = 0 : i64, scratch_operands = 1 : i64, tpu.core_type = #tpu.core_type<tc>} {
    %c0_i32 = arith.constant 0 : i32
    %0 = tpu.memref_slice %arg2[%c0_i32] : memref<1x!tpu.dma_semaphore, #tpu.memory_space<semaphore_mem>> -> memref<1x!tpu.dma_semaphore, #tpu.memory_space<semaphore_mem>>
    %1 = tpu.memref_squeeze %0 : memref<1x!tpu.dma_semaphore, #tpu.memory_space<semaphore_mem>> -> memref<!tpu.dma_semaphore, #tpu.memory_space<semaphore_mem>>
    tpu.enqueue_dma source(%arg0 : memref<2x4x16x16xf32, #tpu.memory_space<any>>) target(%arg1 : memref<2x4x16x16xf32, #tpu.memory_space<any>>) target_semaphore(%1 : memref<!tpu.dma_semaphore, #tpu.memory_space<semaphore_mem>>)
    %c0_i32_0 = arith.constant 0 : i32
    %2 = tpu.memref_slice %arg2[%c0_i32_0] : memref<1x!tpu.dma_semaphore, #tpu.memory_space<semaphore_mem>> -> memref<1x!tpu.dma_semaphore, #tpu.memory_space<semaphore_mem>>
    %3 = tpu.memref_squeeze %2 : memref<1x!tpu.dma_semaphore, #tpu.memory_space<semaphore_mem>> -> memref<!tpu.dma_semaphore, #tpu.memory_space<semaphore_mem>>
    tpu.wait_dma2 semaphore(%3 : memref<!tpu.dma_semaphore, #tpu.memory_space<semaphore_mem>>) src(%arg0 : memref<2x4x16x16xf32, #tpu.memory_space<any>>) dst(%arg1 : memref<2x4x16x16xf32, #tpu.memory_space<any>>)
    return
  }
}

</mosaic_0001>

<bundles_post_ra>
// kernel: dummy_hopfield_pooling.1
= control target key start
LH: loop header
LB: loop body
LE: loop exit
PB: predicated region body
PF: predicated region fallthrough
CT: control target
= control target key end

     0   :  { %s36_s6 = smov [#allocation2]   ;;  %s37_s7 = smov [#allocation3]   ;;  %s55_s0 = inlined_call_operand.hbm [shape: f32[2,4,16,16], index: 0, kind: input, shape index: {}]   ;;  %s56_s1 = inlined_call_operand.hbm [shape: f32[2,4,16,16], index: 1, kind: output, shape index: {}]  }
   0x1   :  { %s38_s8 = smov 0  }
   0x2   :  { %18 = dma.general %s55_s0, 2048, %s56_s1, %s36_s6, %s37_s7, [#allocation4], %s38_s8, 0  }
   0x3   :  { %34 = dma.done.wait [#allocation2], 2048 }
   0x4   :  { %35 = vsyncadd [#allocation2], 4294965248 }
   0x5   :  { %24 = vsyncmov [#allocation2] }
   0x8   :  { %s25_s13 = vpop.sfrf %24 }
   0x9   :  { %p30_p0 = scmp.ne.s32.totalorder %s25_s13, 0 }
   0xb   :  { %29 = shalt.err (%p30_p0)  }

</bundles_post_ra>
